<compile_context>
chip_gen: v6e
topology: v6e:2x2x1
jax: 0.10.0
libtpu: 0.0.40
codegen_flags: <defaults>
</compile_context>

<pallas_src>
import functools

import jax
import jax.numpy as jnp
from jax import lax
from jax.experimental import pallas as pl
from jax.experimental.pallas import tpu as pltpu


def _round_up(x, m):
    return (x + m - 1) // m * m


def _pick_tile(total, candidates):
    for c in candidates:
        if c <= total and total % c == 0:
            return c
    return total


def _toy_linear_kernel(dom_ref, x_ref, w_ref, b_ref, out_ref):
    """One (i, j, k) grid step: out[i, j] (+)= x[i, k] @ w[dom, j, k]^T (+ bias).

    The output tile's block index does not depend on k, so it stays resident in
    VMEM across the whole K reduction: initialise it to the broadcast bias at
    k == 0 and accumulate into it directly (no scratch, no epilogue copy).
    """
    del dom_ref  # only consumed by the index_maps (scalar prefetch, SMEM)
    k = pl.program_id(2)

    @pl.when(k == 0)
    def _():
        out_ref[...] = jnp.broadcast_to(b_ref[...], out_ref.shape)

    # Contract on K against the original [N, K] (out-major) weight layout — no
    # wrapper transpose needed.  bf16 inputs -> single-pass MXU matmul with an
    # f32 accumulator; f32 inputs fall back to an exact HIGHEST contraction.
    precision = lax.Precision.HIGHEST if x_ref.dtype == jnp.float32 else None
    out_ref[...] += lax.dot_general(
        x_ref[...], w_ref[...],
        dimension_numbers=(((1,), (1,)), ((), ())),
        preferred_element_type=jnp.float32,
        precision=precision)


def prepare_toy_linear_params(weights, biases, compute_dtype=jnp.bfloat16):
    """One-time parameter prep (hoisted out of the per-call path).

    Keeps the original [D, out(N), in(K)] layout (no transpose), pads N/K up to
    lane/MXU-friendly 128-multiples (zero padding is exact for the matmul) and
    casts the weights to the MXU compute dtype.  Biases stay f32.
    """
    D, N, K = weights.shape
    Np, Kp = _round_up(N, 128), _round_up(K, 128)
    w = jnp.asarray(weights, compute_dtype)
    if (Np, Kp) != (N, K):
        w = jnp.pad(w, ((0, 0), (0, Np - N), (0, Kp - K)))
    b = jnp.asarray(biases, jnp.float32).reshape(D, 1, N)
    if Np != N:
        b = jnp.pad(b, ((0, 0), (0, 0), (0, Np - N)))
    return w, b


@functools.partial(jax.jit, static_argnames=("force_pallas",))
def toy_linear(x, w_prep, b_prep, domain_idx, force_pallas=False):
    """x: [B, C, S, S]; w_prep: [D, Np, Kp]; b_prep: [D, 1, Np] (from prepare_*)."""
    B, C, S, S2 = x.shape
    assert S == S2
    N = K = S * S
    D, Np, Kp = w_prep.shape
    assert Kp == _round_up(K, 128) and Np == _round_up(N, 128)

    M = B * C
    compute_dtype = w_prep.dtype
    x2 = x.reshape(M, K).astype(compute_dtype)
    dom = jnp.asarray(domain_idx, jnp.int32).reshape((1,))

    # ---- tiny-problem fast path --------------------------------------------
    # At small M the whole problem fits one tile and the Pallas launch /
    # pipeline is pure overhead; a plain XLA dot on the gathered domain weight
    # (same bf16-in / f32-accumulate precision) is faster.
    if not force_pallas and M < 64 and Kp <= 1024 and Np <= 512:
        w = w_prep[dom[0]]              # [Np, Kp]
        b = b_prep[dom[0]]              # [1, Np]
        y = lax.dot_general(x2, w[:N, :K],
                            dimension_numbers=(((1,), (1,)), ((), ())),
                            preferred_element_type=jnp.float32) + b[0, :N]
        return y.reshape(B, C, S, S)

    # ---- tile selection ------------------------------------------------------
    if M <= 512:
        TM = _round_up(M, 8)
    else:
        TM = 512
    Mp = _round_up(M, TM)
    TK = _pick_tile(Kp, (1024, 512, 256, 128))
    TN = _pick_tile(Np, (512, 256, 128))
    # Guarantee >= 2 blocks along a "parallel" axis when the M/N grid would be
    # (1, 1) so both v7x TensorCores get work (neutral on single-TC v5e/v6e).
    if Mp // TM == 1 and Np // TN == 1 and Np >= 256:
        TN = Np // 2 if (Np // 2) % 128 == 0 else 128

    x_p = x2
    if (Mp, Kp) != (M, K):
        x_p = jnp.pad(x2, ((0, Mp - M), (0, Kp - K)))

    grid = (Mp // TM, Np // TN, Kp // TK)

    # Double-buffered VMEM footprint (x + w + bias + out tiles) with headroom;
    # keeps the working set inside v7x's 64 MiB VMEM even with large tiles.
    cbytes = jnp.dtype(compute_dtype).itemsize
    vmem_bytes = 2 * (TM * TK * cbytes + TN * TK * cbytes + TN * 4
                      + TM * TN * 4)
    vmem_limit = int(min(max(2 * vmem_bytes, 16 << 20), 48 << 20))

    out = pl.pallas_call(
        _toy_linear_kernel,
        out_shape=jax.ShapeDtypeStruct((Mp, Np), jnp.float32),
        grid_spec=pltpu.PrefetchScalarGridSpec(
            num_scalar_prefetch=1,
            grid=grid,
            in_specs=[
                # activations [Mp, Kp]
                pl.BlockSpec((TM, TK), lambda i, j, k, d: (i, k)),
                # stacked weights [D, Np, Kp] in the ORIGINAL out-major layout;
                # the SMEM-resident domain index picks which domain is DMA'd.
                pl.BlockSpec((None, TN, TK), lambda i, j, k, d: (d[0], j, k)),
                # stacked biases [D, 1, Np]
                pl.BlockSpec((None, 1, TN), lambda i, j, k, d: (d[0], 0, j)),
            ],
            out_specs=pl.BlockSpec((TM, TN), lambda i, j, k, d: (i, j)),
        ),
        compiler_params=pltpu.CompilerParams(
            dimension_semantics=("parallel", "parallel", "arbitrary"),
            vmem_limit_bytes=vmem_limit),
    )(dom, x_p, w_prep, b_prep)

    if (Mp, Np) != (M, N):
        out = out[:M, :N]
    return out.reshape(B, C, S, S)


def _reference(x, weights, biases, domain_idx):
    """Pure-JAX f32 reference of ToyLinear.forward."""
    B, C, S, _ = x.shape
    W = weights[domain_idx]          # [out, in]
    b = biases[domain_idx]           # [out]
    y = jnp.einsum("bck,nk->bcn",
                   x.reshape(B, C, S * S).astype(jnp.float32),
                   W.astype(jnp.float32),
                   precision=lax.Precision.HIGHEST) + b
    return y.reshape(B, C, S, S)


if __name__ == "__main__":
    # Small shapes consistent with the module: ToyLinear(size=16, domains=3),
    # x of shape [batch=2, channels=4, 16, 16].
    size, domains = 16, 3
    B, C = 2, 4

    key = jax.random.PRNGKey(0)
    kx, kw, kb = jax.random.split(key, 3)
    x = jax.random.normal(kx, (B, C, size, size), dtype=jnp.float32)
    fan_in = size * size
    weights = jax.random.normal(
        kw, (domains, size * size, size * size),
        dtype=jnp.float32) / jnp.sqrt(jnp.float32(fan_in))
    biases = 0.1 * jax.random.normal(
        kb, (domains, size * size), dtype=jnp.float32)

    domain_idx = jnp.int32(1)

    # One-time parameter preparation (hoisted out of the per-call path).
    w_prep, b_prep = prepare_toy_linear_params(weights, biases)

    # Pallas kernel path (forced: at this tiny shape the dispatcher would
    # otherwise take the XLA fast path).
    out = toy_linear(x, w_prep, b_prep, domain_idx, force_pallas=True)
    out = jax.block_until_ready(out)

    # Auto-dispatch (tiny-problem fast path) for the same inputs.
    out_fast = jax.block_until_ready(toy_linear(x, w_prep, b_prep, domain_idx))

    ref = _reference(x, weights, biases, 1)
    assert out.shape == (B, C, size, size), out.shape

    # Deliberate bf16-input / f32-accumulator precision: tolerance vs the f32
    # reference is sized for bf16 rounding of x and W.
    max_err = float(jnp.max(jnp.abs(out - ref)))
    assert jnp.allclose(out, ref, atol=3e-2, rtol=3e-2), max_err

    # Pallas path and XLA fast path use identical precision -> agree tightly.
    max_err_fast = float(jnp.max(jnp.abs(out - out_fast)))
    assert jnp.allclose(out, out_fast, atol=1e-3, rtol=1e-3), max_err_fast

    print("KERNEL_OK")
</pallas_src>

<mosaic_0001>
module attributes {stable_mosaic.version = 11 : i64} {
  func.func @_toy_linear_kernel(%arg0: i32, %arg1: i32, %arg2: i32, %arg3: memref<1xi32, #tpu.memory_space<smem>>, %arg4: memref<8x256xbf16, #tpu.memory_space<vmem>>, %arg5: memref<1x128x256xbf16, #tpu.memory_space<vmem>>, %arg6: memref<1x1x128xf32, #tpu.memory_space<vmem>>, %arg7: memref<8x128xf32, #tpu.memory_space<vmem>>) attributes {dimension_semantics = [#tpu.dimension_semantics<parallel>, #tpu.dimension_semantics<parallel>, #tpu.dimension_semantics<arbitrary>], iteration_bounds = array<i64: 1, 2, 1>, scalar_prefetch = 1 : i64, scratch_operands = 0 : i64, tpu.core_type = #tpu.core_type<tc>, window_params = [{transform_indices = @transform_0, window_bounds = array<i64: 8, 256>}, {transform_indices = @transform_1, window_bounds = array<i64: 1, 128, 256>}, {transform_indices = @transform_2, window_bounds = array<i64: 1, 1, 128>}, {transform_indices = @transform_3, window_bounds = array<i64: 8, 128>}]} {
    %c0_i32 = arith.constant 0 : i32
    %0 = arith.cmpi eq, %arg2, %c0_i32 : i32
    %1 = arith.extui %0 : i1 to i32
    %c0_i32_0 = arith.constant 0 : i32
    %2 = arith.cmpi ne, %1, %c0_i32_0 : i32
    scf.if %2 {
      %c0_9 = arith.constant 0 : index
      %c0_10 = arith.constant 0 : index
      %c0_11 = arith.constant 0 : index
      %10 = vector.load %arg6[%c0_9, %c0_10, %c0_11] : memref<1x1x128xf32, #tpu.memory_space<vmem>>, vector<1x1x128xf32>
      %11 = vector.shape_cast %10 : vector<1x1x128xf32> to vector<1x128xf32>
      %12 = vector.shape_cast %11 : vector<1x128xf32> to vector<1x128xf32>
      %13 = vector.broadcast %12 : vector<1x128xf32> to vector<8x128xf32>
      %c0_12 = arith.constant 0 : index
      %c0_13 = arith.constant 0 : index
      %14 = vector.load %arg7[%c0_12, %c0_13] : memref<8x128xf32, #tpu.memory_space<vmem>>, vector<8x128xf32>
      tpu.vector_store %arg7[%c0_12, %c0_13], %13 {strides = array<i32>} : memref<8x128xf32, #tpu.memory_space<vmem>>, vector<8x128xf32>,
    } else {
    }
    %c0 = arith.constant 0 : index
    %c0_1 = arith.constant 0 : index
    %3 = vector.load %arg7[%c0, %c0_1] : memref<8x128xf32, #tpu.memory_space<vmem>>, vector<8x128xf32>
    %c0_2 = arith.constant 0 : index
    %c0_3 = arith.constant 0 : index
    %4 = vector.load %arg4[%c0_2, %c0_3] : memref<8x256xbf16, #tpu.memory_space<vmem>>, vector<8x256xbf16>
    %c0_4 = arith.constant 0 : index
    %c0_5 = arith.constant 0 : index
    %c0_6 = arith.constant 0 : index
    %5 = vector.load %arg5[%c0_4, %c0_5, %c0_6] : memref<1x128x256xbf16, #tpu.memory_space<vmem>>, vector<1x128x256xbf16>
    %6 = vector.shape_cast %5 : vector<1x128x256xbf16> to vector<128x256xbf16>
    %cst = arith.constant dense<0.000000e+00> : vector<8x128xf32>
    %7 = tpu.matmul %4, %6, %cst {dimension_numbers = #tpu.dot_dimension_numbers<[1], [1], [0], [0], [0, 0, 1, 0], [], []>} : vector<8x256xbf16>, vector<128x256xbf16>, vector<8x128xf32> -> vector<8x128xf32>
    %8 = arith.addf %3, %7 : vector<8x128xf32>
    %c0_7 = arith.constant 0 : index
    %c0_8 = arith.constant 0 : index
    %9 = vector.load %arg7[%c0_7, %c0_8] : memref<8x128xf32, #tpu.memory_space<vmem>>, vector<8x128xf32>
    tpu.vector_store %arg7[%c0_7, %c0_8], %8 {strides = array<i32>} : memref<8x128xf32, #tpu.memory_space<vmem>>, vector<8x128xf32>,
    return
  }
  func.func @transform_0(%arg0: i32, %arg1: i32, %arg2: i32, %arg3: memref<1xi32, #tpu.memory_space<smem>>) -> (i32, i32) {
    %c0_i32 = arith.constant 0 : i32
    return %arg0, %arg2 : i32, i32
  }
  func.func @transform_1(%arg0: i32, %arg1: i32, %arg2: i32, %arg3: memref<1xi32, #tpu.memory_space<smem>>) -> (i32, i32, i32) {
    %c0 = arith.constant 0 : index
    %0 = memref.load %arg3[%c0] : memref<1xi32, #tpu.memory_space<smem>>
    %c0_i32 = arith.constant 0 : i32
    return %0, %arg1, %arg2 : i32, i32, i32
  }
  func.func @transform_2(%arg0: i32, %arg1: i32, %arg2: i32, %arg3: memref<1xi32, #tpu.memory_space<smem>>) -> (i32, i32, i32) {
    %c0 = arith.constant 0 : index
    %0 = memref.load %arg3[%c0] : memref<1xi32, #tpu.memory_space<smem>>
    %c0_i32 = arith.constant 0 : i32
    %c0_i32_0 = arith.constant 0 : i32
    return %0, %c0_i32, %arg1 : i32, i32, i32
  }
  func.func @transform_3(%arg0: i32, %arg1: i32, %arg2: i32, %arg3: memref<1xi32, #tpu.memory_space<smem>>) -> (i32, i32) {
    %c0_i32 = arith.constant 0 : i32
    return %arg0, %arg1 : i32, i32
  }
}

</mosaic_0001>

<bundles_post_ra>
// kernel: toy_linear.1
= control target key start
LH: loop header
LB: loop body
LE: loop exit
PB: predicated region body
PF: predicated region fallthrough
CT: control target
= control target key end

     0   :  { %s970_s0 = inlined_call_operand.<no memory space> [shape: s32[1], index: 0, kind: input, shape index: {}]   ;;  %s971_s1 = inlined_call_operand.vmem [shape: bf16[8,256], index: 1, kind: input, shape index: {}]   ;;  %s972_s2 = inlined_call_operand.hbm [shape: bf16[3,256,256], index: 2, kind: input, shape index: {}]   ;;  %s973_s3 = inlined_call_operand.vmem [shape: f32[3,1,256], index: 3, kind: input, shape index: {}]   ;;  %s974_s4 = inlined_call_operand.vmem [shape: f32[8,256], index: 4, kind: output, shape index: {}]  }
   0x1   :  { %9 = sst [smem:[#allocation3]] %s970_s0 }
   0x2   :  { %10 = vsyncpa [#allocation5], 0 }
   0x3   :  { %12 = vsyncpa [#allocation5 + $0x1], 0  ;;  %s829_s17 = smov 0   ;;  %s831_s18 = smov 0  }
   0x4   :  { %s833_s19 = smov 0   ;;  %s835_s20 = smov 0  }
   0x5   :  { %s837_s21 = smov 0   ;;  %s839_s22 = smov 0  }
   0x6 LB: > { %s599_s0 = sadd.s32 4294967295, %s796_s22   ;;  %s33_s23 = sadd.s32 1, %s792_s21  ;;  %s796_s22 = sphi %s839_s22, %s18_s22   ;;  %s792_s21 = sphi %s837_s21, %s984_s21   ;;  %s788_s20 = sphi %s835_s20, %s983_s20   ;;  %s784_s19 = sphi %s833_s19, %s982_s19   ;;  %s780_s18 = sphi %s831_s18, %s981_s18   ;;  %s776_s17 = sphi %s829_s17, %s980_s17  }
   0x7   : > { %p35_p0 = scmp.ge.s32.totalorder %s33_s23, 2  ;;  %s69_s24 = sld [smem:[#allocation3]] }
   0x8   : > { %s78_s25 = sadd.s32 1, %s784_s19  ;;  %p85_p1 = scmp.ne.s32.totalorder %s784_s19, %s780_s18 }
   0x9   : > { %s986_s23 = smov (%p35_p0, %s33_s23), 0  ;;  %p86_p2 = scmp.eq.s32.totalorder %s796_s22, 0 }
   0xa   : > { %p91_p3 = scmp.ne.s32.totalorder %s780_s18, %s776_s17  ;;  %s72_s26 = ssub.s32 %s792_s21, %s986_s23 }
   0xb   : > { %p92_p4 = scmp.eq.s32.totalorder %s599_s0, 0  ;;  %p868_p5 = por %p86_p2, %p85_p1 }
   0xc   : > { %p641_p7 = scmp.lt.s32.totalorder %s796_s22, 2  ;;  %p76_p8 = scmp.eq.s32.totalorder %s72_s26, 0 }
   0xd   : > { %p872_p6 = por %p92_p4, %p91_p3  ;;  %s186_s29 = sand.u32 1, %s784_s19  }
   0xe   : > { %s604_s30 = sshll.u32 %s186_s29, 7  ;;  %s634_s6 = sshll.u32 %s792_s21, 5 }
   0xf   : > { %s977_s28 = scalar_select %p872_p6, 1, 0 }
  0x10   : > { %s879_s5 = scalar_select %p76_p8, %s784_s19, %s78_s25  }
  0x11   : > { %s607_s7 = sshll.u32 %s69_s24, 6  ;;  %s190_s8 = scalar_lea.vmem [#allocation4], %s604_s30 }
  0x12   : > { %s203_s9 = sshll.u32 %s190_s8, 4  ;;  %s200_s10 = sadd.s32 %s634_s6, %s607_s7  ;;  %s882_s9 = int_to_ptr.vmem [resolvable:$true] %s203_s9 }
  0x13   : > { %s608_s11 = sshll.u32 %s200_s10, 6  ;;  %p886_p9 = pnand %p641_p7, %p868_p5 }
  0x14   : > { %s893_s15 = scalar_lea.hbm %s972_s2, %s608_s11  ;;  %s895_s16 = scalar_lea.sflag [#allocation5], %s186_s29 }
  0x15   : > { %s718_s17 = scalar_lea.hbm %s893_s15, 2048  ;;  %p720_p11 = pneg %p886_p9 }
  0x16   : > { %p719_p10 = scmp.ne.s32.totalorder %s893_s15, %s718_s17  ;;  %s723_s25 = scalar_lea.hbm %s972_s2, 12288 }
  0x17   : > { %p724_p0 = scmp.lt.s32.totalorder %s893_s15, %s972_s2  ;;  %p725_p1 = scmp.lt.s32.totalorder %s723_s25, %s718_s17 }
  0x18   : > { %p721_p12 = pnand %p720_p11, %p719_p10 }
  0x19   : > { %p726_p2 = por %p725_p1, %p724_p0 }
  0x1a   : > { %p722_p13 = pneg %p721_p12 }
  0x1c   : > { %p727_p3 = pnand %p726_p2, %p722_p13 }
  0x1e   : > { %730 = shalt.err (!%p727_p3)
}
  0x1f   : > { %s731_s29 = scalar_lea.vmem %s882_s9, 2048  ;;  %s798_s30 = smov [#allocation4]  }
  0x20   : > { %p732_p4 = scmp.ne.s32.totalorder %s882_s9, %s731_s29  ;;  %s736_s6 = sshll.u32 %s798_s30, 4  ;;  %s737_s6 = int_to_ptr.vmem [resolvable:$false] %s736_s6 }
  0x21   : > { %s738_s7 = scalar_lea.vmem %s737_s6, 4096  ;;  %p739_p8 = scmp.lt.s32.totalorder %s882_s9, %s737_s6 }
  0x22   : > { %p734_p5 = pnand %p732_p4, %p720_p11  ;;  %p740_p10 = scmp.lt.s32.totalorder %s738_s7, %s731_s29 }
  0x24   : > { %p735_p7 = pneg %p734_p5  ;;  %p741_p12 = por %p740_p10, %p739_p8 }
  0x26   : > { %p742_p6 = pnand %p741_p12, %p735_p7 }
  0x28   : > { %745 = shalt.err (!%p742_p6)
}
  0x29   : > { %s799_s8 = smov 128   ;;  %s800_s10 = smov 8  }
  0x2a   : > { %640 = dma.hbm_to_vmem [thread:$0]  (!%p886_p9), %s893_s15, 2048, %s882_s9, %s895_s16, %s799_s8, %s799_s8, %s800_s10  }
  0x2b   : > { %p609_p11 = scmp.ge.s32.totalorder %s796_s22, 1  ;;  %p223_p13 = scmp.lt.s32.totalorder %s796_s22, 3 }
  0x2d   : > { %p224_p0 = pnand %p609_p11, %p223_p13 }
  0x2e   : > { %s229_s11 = sand.u32 (!%p224_p0), 1, %s780_s18   ;;  %p979_p6 = scmp.ne.s32.totalorder (!%p224_p0), %s977_s28, 0 }
  0x2f   : > { %227 = sbr.rel (%p224_p0) target bundleno = 317 (0x13d), region = 32  ;;  %s610_s13 = sshll.u32 (!%p224_p0), %s229_s11, 7 }
  0x30   : > { %s230_s14 = scalar_lea.sflag (!%p224_p0), [#allocation5], %s229_s11  ;;  %s919_s17 = scalar_lea.vmem (!%p224_p0), [#allocation4], %s610_s13 }
  0x34   : > { %771 = dma.done.wait (%p979_p6), %s230_s14, 2048  }
  0x35   : > { %773 = vsyncadd (%p979_p6), %s230_s14, 4294965248  ;;  %v692_v0 = vld [vmem:[%s919_s17 + $0x74] ss:$8 sps:$4 sm:$0xff]   ;;  %v694_v1 = vld [vmem:[%s919_s17 + $0x70] ss:$8 sps:$4 sm:$0xff]   ;;  %s289_s12 = sld [smem:[#allocation3]] }
  0x36   : > { %424 = vmatprep.subr.bf16.mxu0 %v692_v0  ;;  %v695_v2 = vld [vmem:[%s919_s17 + $0x64] ss:$8 sps:$4 sm:$0xff]   ;;  %v697_v3 = vld [vmem:[%s919_s17 + $0x60] ss:$8 sps:$4 sm:$0xff]   ;;  %v698_v4 = vld [vmem:[%s919_s17 + $0x54] ss:$8 sps:$4 sm:$0xff]  }
  0x37   : > { %425 = vmatpush1.bf16.xpose.msra.mxu0 %v694_v1  ;;  %v320_v5 = vld [vmem:[%s971_s1] sm:$0xff]  ;;  %v700_v7 = vld [vmem:[%s919_s17 + $0x50] ss:$8 sps:$4 sm:$0xff]   ;;  %v704_v10 = vld [vmem:[%s919_s17 + $0x34] ss:$8 sps:$4 sm:$0xff]   ;;  %p292_p1 = scmp.lt.s32.totalorder %s788_s20, 1 }
  0x38   : > { %426 = vmatprep.subr.bf16.mxu0 %v695_v2  ;;  %v615_v6 = vcombine.high %v320_v5, %v320_v5  ;;  %v701_v8 = vld [vmem:[%s919_s17 + $0x44] ss:$8 sps:$4 sm:$0xff]   ;;  %v703_v9 = vld [vmem:[%s919_s17 + $0x40] ss:$8 sps:$4 sm:$0xff]   ;;  %v706_v11 = vld [vmem:[%s919_s17 + $0x30] ss:$8 sps:$4 sm:$0xff]   ;;  %v614_v18 = vcombine.low %v320_v5, %v320_v5 }
  0x39   : > { %v707_v12 = vld [vmem:[%s919_s17 + $0x24] ss:$8 sps:$4 sm:$0xff]   ;;  %v709_v13 = vld [vmem:[%s919_s17 + $0x20] ss:$8 sps:$4 sm:$0xff]   ;;  %v710_v14 = vld [vmem:[%s919_s17 + $0x14] ss:$8 sps:$4 sm:$0xff]  }
  0x3a   : > { %456 = vmatprep.mubr.bf16.mxu0 %v615_v6  ;;  %v712_v15 = vld [vmem:[%s919_s17 + $0x10] ss:$8 sps:$4 sm:$0xff]   ;;  %v713_v16 = vld [vmem:[%s919_s17 + $0x4] ss:$8 sps:$4 sm:$0xff]   ;;  %v715_v17 = vld [vmem:[%s919_s17] ss:$8 sps:$4 sm:$0xff]  }
  0x3b   : > { %p290_p9 = scmp.lt.s32.totalorder %s289_s12, 2  ;;  %s990_s20 = smov (!%p292_p1, %s788_s20), 1 }
  0x3c   : > { %s612_s26 = sshll.u32 %s990_s20, 3 }
  0x3d   : > { %s988_s12 = smov (!%p290_p9, %s289_s12), 2  ;;  %s305_s30 = scalar_lea.vmem %s974_s4, %s612_s26 }
  0x3e   : > { %s611_s15 = sshll.u32 %s988_s12, 1 }
  0x3f   : > { %427 = vmatpush1.bf16.xpose.msra.mxu0 %v697_v3  ;;  %s295_s16 = sadd.s32 %s611_s15, %s990_s20 }
  0x40   : > { %428 = vmatprep.subr.bf16.mxu0 %v698_v4  ;;  %s296_s25 = scalar_lea.vmem %s973_s3, %s295_s16 }
  0x41   : > { %v613_v19 = vld [vmem:[%s296_s25] ss:$0 sm:$0xff] }
  0x47   : > { %429 = vmatpush1.bf16.xpose.msra.mxu0 %v700_v7 }
  0x48   : > { %430 = vmatprep.subr.bf16.mxu0 %v701_v8 }
  0x4f   : > { %431 = vmatpush1.bf16.xpose.msra.mxu0 %v703_v9 }
  0x50   : > { %432 = vmatprep.subr.bf16.mxu0 %v704_v10 }
  0x57   : > { %433 = vmatpush1.bf16.xpose.msra.mxu0 %v706_v11 }
  0x58   : > { %434 = vmatprep.subr.bf16.mxu0 %v707_v12 }
  0x5f   : > { %435 = vmatpush1.bf16.xpose.msra.mxu0 %v709_v13 }
  0x60   : > { %436 = vmatprep.subr.bf16.mxu0 %v710_v14 }
  0x67   : > { %437 = vmatpush1.bf16.xpose.msra.mxu0 %v712_v15 }
  0x68   : > { %438 = vmatprep.subr.bf16.mxu0 %v713_v16 }
  0x6f   : > { %439 = vmatpush1.bf16.xpose.msra.mxu0 %v715_v17 }
  0x76   : > { %457 = vmatmul.mubr.bf16.vlgmr.msra.gmra.mxu0 %v614_v18 }
 0x136   : > { %v458_v20 = vpop.f32.mrf.mxu0 }
 0x137   : > { %v464_v21 = vadd.f32 %v613_v19, %v458_v20 }
 0x138   : > { %v460_v22 = vpop.f32.mrf.mxu0 }
 0x139   : > { %465 = vst [vmem:[%s305_s30] sm:$0xff] %v464_v21 }
 0x13a   : > { %v461_v23 = vpop.f32.mrf.mxu0 }
 0x13c   : > { %v462_v24 = vpop.f32.mrf.mxu0 }
 0x13d PF: > { %s18_s22 = sadd.s32 1, %s796_s22   ;;  %s980_s17 = smov %s780_s18 }
 0x13e   : > { %p15_p2 = scmp.ge.s32.totalorder %s18_s22, 4   ;;  %s981_s18 = smov %s784_s19 }
 0x13f   : > { %s982_s19 = smov %s879_s5  ;;  %s983_s20 = smov %s792_s21 }
 0x140   : > { %s984_s21 = smov %s986_s23  ;;  %17 = sbr.rel (!%p15_p2) target bundleno = 6 (0x6), region = 82 }
 0x145   :  { %493 = vsyncpa [#allocation5], 1 }
 0x146   :  { %495 = vsyncpa [#allocation5 + $0x1], 1 }

</bundles_post_ra>
